<compile_context>
chip_gen: v6e
topology: v6e:2x2x1
jax: 0.10.0
libtpu: 0.0.40
codegen_flags: <defaults>
</compile_context>

<pallas_src>
import math

import jax
import jax.numpy as jnp
from jax.experimental import pallas as pl
from jax.experimental.pallas import tpu as pltpu


def _copy_kernel(x_ref, o_ref):
    # The entire forward pass of IdentityEncoder: return x.
    o_ref[...] = x_ref[...]


def _choose_2d_view(shape):
    """Pick a lane-dense (rows, lanes) factorization of the element count."""
    total = math.prod(shape)
    for lane in (512, 256, 128):          # prefer wide, 128-aligned lanes
        if total % lane == 0:
            return total // lane, lane
    # Fallback: keep the original last dim. The block then spans the full lane
    # axis, which is always legal even when it is not a multiple of 128.
    lane = shape[-1]
    return total // lane, lane


def _pallas_identity_copy(x):
    """Tiled, lane-dense identity copy through a Pallas kernel."""
    if x.ndim == 0 or x.size == 0:
        return x  # nothing to tile; identity is exact

    orig_shape = x.shape
    rows, lane = _choose_2d_view(orig_shape)
    x2 = x.reshape(rows, lane)

    # Row tile: whole array for small inputs, else 1024 rows (multiple of
    # 8/16/32 sublanes -> (8,128)-aligned for f32 / bf16 / int8). With
    # lane <= 512, a f32 tile is <= 2 MiB, so double-buffered in+out buffers
    # (4 x 2 MiB) fit comfortably in the default scoped VMEM on all chips.
    row_tile = rows if rows <= 1024 else 1024
    grid = (pl.cdiv(rows, row_tile),)

    out = pl.pallas_call(
        _copy_kernel,
        out_shape=jax.ShapeDtypeStruct((rows, lane), x.dtype),
        grid=grid,
        in_specs=[pl.BlockSpec((row_tile, lane), lambda i: (i, 0))],
        out_specs=pl.BlockSpec((row_tile, lane), lambda i: (i, 0)),
        input_output_aliases={0: 0},
        compiler_params=pltpu.CompilerParams(
            dimension_semantics=("parallel",),
        ),
    )(x2)
    return out.reshape(orig_shape)


def identity_encoder_forward(x, dummy_parameter=None, *, force_pallas=False):
    """Pallas equivalent of IdentityEncoder.forward(x) -> x.

    `dummy_parameter` is accepted (and ignored) to mirror the PyTorch module.
    By default this is a true no-op (`return x`) — the fastest possible
    implementation. Set `force_pallas=True` to route through the tiled Pallas
    copy kernel (e.g. when an explicit kernel boundary is required).
    """
    del dummy_parameter  # unused, exactly as in the PyTorch module
    if not force_pallas:
        return x
    return _pallas_identity_copy(x)


def init_identity_encoder_params(input_dim, key):
    """Deterministic stand-in for IdentityEncoder.__init__.

    Mirrors `torch.nn.Parameter(torch.rand((1,)))` and the side effect
    `opts.latent_dim = input_dim` (returned here as metadata).
    """
    dummy_parameter = jax.random.uniform(key, (1,), dtype=jnp.float32)
    latent_dim = input_dim
    return {"dummy_parameter": dummy_parameter, "latent_dim": latent_dim}


if __name__ == "__main__":
    key = jax.random.PRNGKey(0)
    k_param, k_x, k_big = jax.random.split(key, 3)

    # Small shapes consistent with the module (batch, num_nodes, input_dim).
    batch, num_nodes, input_dim = 2, 8, 32
    params = init_identity_encoder_params(input_dim, k_param)

    x = jax.random.normal(k_x, (batch, num_nodes, input_dim), dtype=jnp.float32)

    # Fast path (preferred in production): literal identity.
    y_fast = identity_encoder_forward(x, params["dummy_parameter"])
    assert y_fast.shape == x.shape and y_fast.dtype == x.dtype
    assert bool(jnp.all(y_fast == x))

    # Pallas kernel path (single lane-dense block for this tiny input).
    y = identity_encoder_forward(x, params["dummy_parameter"], force_pallas=True)
    y = jax.block_until_ready(y)
    assert y.shape == x.shape and y.dtype == x.dtype
    assert bool(jnp.all(y == x))

    # Moderately sized input to exercise the multi-block tiled / parallel path
    # (8 * 4096 * 64 f32 = 8 MiB -> (4096, 512) view, 4 row tiles of 1024).
    x_big = jax.random.normal(k_big, (8, 4096, 64), dtype=jnp.float32)
    y_big = identity_encoder_forward(x_big, params["dummy_parameter"],
                                     force_pallas=True)
    y_big = jax.block_until_ready(y_big)
    assert y_big.shape == x_big.shape and y_big.dtype == x_big.dtype
    assert bool(jnp.all(y_big == x_big))

    print("KERNEL_OK")
</pallas_src>

<mosaic_0001>
module attributes {stable_mosaic.version = 11 : i64} {
  func.func @_copy_kernel(%arg0: i32, %arg1: memref<1x512xf32, #tpu.memory_space<vmem>>, %arg2: memref<1x512xf32, #tpu.memory_space<vmem>>) attributes {dimension_semantics = [#tpu.dimension_semantics<parallel>], iteration_bounds = array<i64: 1>, scalar_prefetch = 0 : i64, scratch_operands = 0 : i64, tpu.core_type = #tpu.core_type<tc>, window_params = [{transform_indices = @transform_0, window_bounds = array<i64: 1, 512>}, {transform_indices = @transform_1, window_bounds = array<i64: 1, 512>}]} {
    %c0 = arith.constant 0 : index
    %c0_0 = arith.constant 0 : index
    %0 = vector.load %arg1[%c0, %c0_0] : memref<1x512xf32, #tpu.memory_space<vmem>>, vector<1x512xf32>
    %c0_1 = arith.constant 0 : index
    %c0_2 = arith.constant 0 : index
    %1 = vector.load %arg2[%c0_1, %c0_2] : memref<1x512xf32, #tpu.memory_space<vmem>>, vector<1x512xf32>
    tpu.vector_store %arg2[%c0_1, %c0_2], %0 {strides = array<i32>} : memref<1x512xf32, #tpu.memory_space<vmem>>, vector<1x512xf32>,
    return
  }
  func.func @transform_0(%arg0: i32) -> (i32, i32) {
    %c0_i32 = arith.constant 0 : i32
    %c0_i32_0 = arith.constant 0 : i32
    return %arg0, %c0_i32 : i32, i32
  }
  func.func @transform_1(%arg0: i32) -> (i32, i32) {
    %c0_i32 = arith.constant 0 : i32
    %c0_i32_0 = arith.constant 0 : i32
    return %arg0, %c0_i32 : i32, i32
  }
}

</mosaic_0001>

<bundles_post_ra>
// kernel: tpu_custom_call.1
= control target key start
LH: loop header
LB: loop body
LE: loop exit
PB: predicated region body
PF: predicated region fallthrough
CT: control target
= control target key end

     0   :  { %6 = vsyncpa [#allocation3], 0  ;;  %s106_s0 = inlined_call_operand.hbm [shape: f32[1,512], index: 0, kind: input, shape index: {}, may-alias: {0,1}]   ;;  %s107_s1 = inlined_call_operand.hbm [shape: f32[1,512], index: 1, kind: output, shape index: {}, may-alias: {0,1}]  }
   0x1   :  { %7 = vsyncpa [#allocation4], 0  ;;  %s88_s6 = smov [#allocation2]  }
   0x2   :  { %s14_s7 = sshll.u32 %s88_s6, 4  ;;  %s15_s7 = int_to_ptr.vmem [resolvable:$true] %s14_s7 }
   0x3   :  { %s52_s8 = scalar_lea.vmem %s15_s7, 64  ;;  %p57_p1 = scmp.lt.s32.totalorder %s15_s7, %s15_s7 }
   0x4   :  { %p53_p0 = scmp.ne.s32.totalorder %s15_s7, %s52_s8  ;;  %p58_p2 = scmp.lt.s32.totalorder %s52_s8, %s52_s8 }
   0x6   :  { %p59_p3 = por %p58_p2, %p57_p1 }
   0x8   :  { %p60_p4 = pnand %p59_p3, %p53_p0 }
   0xa   :  { %63 = shalt.err (!%p60_p4)
}
   0xb   :  { %17 = dma.hbm_to_vmem [thread:$0]  %s106_s0, 64, %s15_s7, [#allocation3]  }
   0xc   :  { %84 = dma.done.wait [#allocation3], 64  }
   0xd   :  { %85 = vsyncadd [#allocation3], 4294967232  ;;  %v22_v0 = vlaneseq  ;;  %s89_s11 = smov [#allocation5]   ;;  %v21_v1 = vld [vmem:[#allocation2] sm:$0xf] }
   0xe   :  { %s33_s12 = sshll.u32 %s89_s11, 4  ;;  %s34_s12 = int_to_ptr.vmem [resolvable:$true] %s33_s12 }
   0xf   :  { %vm24_vm0 = vcmp.lt.s32.totalorder %v22_v0, 512  ;;  %s64_s13 = scalar_lea.vmem %s34_s12, 64  ;;  %p69_p6 = scmp.lt.s32.totalorder %s34_s12, %s34_s12 }
  0x10   :  { %26 = vst.msk [vmem:[#allocation5] sm:$0xf] %vm24_vm0, %v21_v1  ;;  %p65_p5 = scmp.ne.s32.totalorder %s34_s12, %s64_s13  ;;  %p70_p7 = scmp.lt.s32.totalorder %s64_s13, %s64_s13 }
  0x12   :  { %p71_p8 = por %p70_p7, %p69_p6 }
  0x14   :  { %p72_p9 = pnand %p71_p8, %p65_p5 }
  0x16   :  { %75 = shalt.err (!%p72_p9)
}
  0x17   :  { %36 = dma.vmem_to_hbm [thread:$0]  %s34_s12, 64, %s107_s1, [#allocation4]  }
  0x18   :  { %86 = dma.done.wait [#allocation4], 64  }
  0x19   :  { %87 = vsyncadd [#allocation4], 4294967232 }
  0x1a   :  { %40 = vsyncpa [#allocation3], 1 }
  0x1b   :  { %41 = vsyncpa [#allocation4], 1 }

</bundles_post_ra>
